<compile_context>
chip_gen: v5e
topology: v5e:2x2
jax: 0.10.0
libtpu: 0.0.40
codegen_flags: <defaults>
</compile_context>

<pallas_src>
import jax
import jax.numpy as jnp
from jax.experimental import pallas as pl
from jax.experimental.pallas import tpu as pltpu


INPUT_DIM = 140          # true feature width of the autoencoder
PADDED_DIM = 256         # feature axis padded to 2*128 lanes (lane-dense I/O)

# (in_dim_in_kernel, out_dim_in_kernel, apply_relu) for the 6 Linear layers.
# Layer 1 consumes the lane-padded input (256) and layer 6 produces the
# lane-padded output (256); the extra rows/cols of W1/W6/b6 are zero, so the
# computation is identical to the original 140-wide layers.
_LAYER_DIMS = (
    (PADDED_DIM, 32, True),
    (32, 16, True),
    (16, 8, True),
    (8, 16, True),
    (16, 32, True),
    (32, PADDED_DIM, False),   # final layer -> sigmoid
)


def _round_up(n, m):
    return ((n + m - 1) // m) * m


def _autoencoder_kernel(x_ref, a1, a2, a3, a4, a5, a6, o_ref):
    """Fused encoder+decoder forward for one batch tile.

    Each a_i packs weight + bias:
        a_i[0:in, :] = W_i   (stored [in, out], i.e. transposed nn.Linear weight)
        a_i[in,  :]  = b_i
        remaining rows are zero padding (row count is a multiple of 8).
    """
    a_refs = (a1, a2, a3, a4, a5, a6)
    h = x_ref[...]
    for a_ref, (din, dout, relu) in zip(a_refs, _LAYER_DIMS):
        w = a_ref[0:din, :]                                 # [din, dout]
        b = a_ref[din:din + 1, :].astype(jnp.float32)       # [1,  dout]
        y = jnp.dot(h.astype(w.dtype), w,
                    preferred_element_type=jnp.float32) + b  # f32 accumulation
        h = jnp.maximum(y, 0.0) if relu else y
    # Numerically-stable sigmoid: 0.5 * (tanh(x/2) + 1) -> tanh on the EUP,
    # no exp(+large) inf intermediates, frees VALU bundles.
    o_ref[...] = (0.5 * jnp.tanh(0.5 * h) + 0.5).astype(o_ref.dtype)


def pack_params(params, dtype=jnp.float32):
    """Pack (W, b) per layer into a single [in+8, out] array per layer.

    `params` holds the ORIGINAL sizes (W1: [140, 32], W6: [32, 140], biases 1-D);
    the packed arrays use the kernel (lane-padded) sizes from _LAYER_DIMS.
    """
    packed = []
    for (w, b), (din, dout, _) in zip(params, _LAYER_DIMS):
        w = jnp.asarray(w, jnp.float32)
        b = jnp.asarray(b, jnp.float32).reshape(-1)
        a = jnp.zeros((din + 8, dout), jnp.float32)
        a = a.at[: w.shape[0], : w.shape[1]].set(w)   # weight (zero-padded)
        a = a.at[din, : b.shape[0]].set(b)            # bias row at offset `din`
        packed.append(a.astype(dtype))
    return packed


def anomaly_detector_forward(x, params, *, batch_tile=1024,
                             compute_dtype=jnp.float32):
    """x: [B, 140] float32.  params: 6 x (W [in, out], b [out]).  Returns [B, 140] f32."""
    B, D = x.shape
    assert D == INPUT_DIM
    P = PADDED_DIM

    # ---- choose a batch tile (multiple of 8) and pad the batch to it --------
    tile = max(8, min(_round_up(batch_tile, 8), _round_up(B, 8)))
    Bp = _round_up(B, tile)
    # v7x has 2 TensorCores: prefer >= 2 grid steps when the batch is large
    # enough so dimension_semantics=("parallel",) can shard across them.
    if Bp // tile == 1 and Bp >= 512:
        tile = _round_up(Bp // 2, 8)
        Bp = _round_up(B, tile)
    grid = (Bp // tile,)

    # ---- lane-dense padding: batch -> Bp rows, features 140 -> 256 lanes ----
    xp = jnp.zeros((Bp, P), compute_dtype)
    xp = xp.at[:B, :D].set(x.astype(compute_dtype))

    packed = pack_params(params, dtype=compute_dtype)

    x_spec = pl.BlockSpec((tile, P), lambda i: (i, 0))
    o_spec = pl.BlockSpec((tile, P), lambda i: (i, 0))
    # Tiny constant params: full-array blocks with a constant index_map ->
    # they stay resident in VMEM across grid steps (no per-step re-DMA).
    param_specs = [pl.BlockSpec(a.shape, lambda i: (0, 0)) for a in packed]

    fn = pl.pallas_call(
        _autoencoder_kernel,
        out_shape=jax.ShapeDtypeStruct((Bp, P), jnp.float32),
        grid_spec=pltpu.PrefetchScalarGridSpec(
            num_scalar_prefetch=0,
            grid=grid,
            in_specs=[x_spec] + param_specs,
            out_specs=o_spec,
        ),
        compiler_params=pltpu.CompilerParams(
            dimension_semantics=("parallel",),
            # Large batch tiles (double-buffered in+out) can exceed the scoped
            # VMEM default (16/32 MiB) long before physical VMEM; raise it.
            vmem_limit_bytes=48 * 1024 * 1024,
        ),
    )
    out = fn(xp, *packed)
    return out[:B, :D]


def init_params(key, input_dim=INPUT_DIM):
    """Deterministic synthetic weights with nn.Linear-like uniform init.

    Weights are stored as [in, out] (transpose of PyTorch's nn.Linear weight)."""
    dims_in = (input_dim, 32, 16, 8, 16, 32)
    dims_out = (32, 16, 8, 16, 32, input_dim)
    params = []
    for din, dout in zip(dims_in, dims_out):
        key, kw, kb = jax.random.split(key, 3)
        bound = 1.0 / jnp.sqrt(float(din))
        w = jax.random.uniform(kw, (din, dout), jnp.float32, -bound, bound)
        b = jax.random.uniform(kb, (dout,), jnp.float32, -bound, bound)
        params.append((w, b))
    return params


def reference_forward(x, params):
    """Plain-JAX reference for correctness checking."""
    h = x
    for i, (w, b) in enumerate(params):
        h = h @ w + b
        h = jnp.maximum(h, 0.0) if i < len(params) - 1 else jax.nn.sigmoid(h)
    return h


if __name__ == "__main__":
    key = jax.random.PRNGKey(0)
    kx, kp = jax.random.split(key)
    params = init_params(kp)

    # --- small single-tile batch, f32 (tight tolerance) ----------------------
    B = 64
    x = jax.random.normal(kx, (B, INPUT_DIM), jnp.float32)
    out = jax.block_until_ready(anomaly_detector_forward(x, params))
    ref = reference_forward(x, params)
    assert out.shape == (B, INPUT_DIM)
    assert jnp.allclose(out, ref, atol=1e-5, rtol=1e-5), "f32 mismatch vs reference"

    # --- ragged batch, multi-step grid (B=300 -> padded 384, 3 steps) --------
    B2 = 300
    x2 = jax.random.normal(jax.random.PRNGKey(1), (B2, INPUT_DIM), jnp.float32)
    out2 = jax.block_until_ready(
        anomaly_detector_forward(x2, params, batch_tile=128))
    ref2 = reference_forward(x2, params)
    assert out2.shape == (B2, INPUT_DIM)
    assert jnp.allclose(out2, ref2, atol=1e-5, rtol=1e-5), "ragged-batch mismatch"

    # --- bf16 compute path (v6e/v7x fast path), f32 accumulation -------------
    out_bf16 = jax.block_until_ready(
        anomaly_detector_forward(x, params, compute_dtype=jnp.bfloat16))
    assert jnp.allclose(out_bf16, ref, atol=5e-2), "bf16 path mismatch"

    print("KERNEL_OK")
</pallas_src>

<mosaic_0001>
module attributes {stable_mosaic.version = 11 : i64} {
  func.func @_autoencoder_kernel(%arg0: i32, %arg1: memref<64x256xf32, #tpu.memory_space<vmem>>, %arg2: memref<264x32xf32, #tpu.memory_space<vmem>>, %arg3: memref<40x16xf32, #tpu.memory_space<vmem>>, %arg4: memref<24x8xf32, #tpu.memory_space<vmem>>, %arg5: memref<16x16xf32, #tpu.memory_space<vmem>>, %arg6: memref<24x32xf32, #tpu.memory_space<vmem>>, %arg7: memref<40x256xf32, #tpu.memory_space<vmem>>, %arg8: memref<64x256xf32, #tpu.memory_space<vmem>>) attributes {dimension_semantics = [#tpu.dimension_semantics<parallel>], iteration_bounds = array<i64: 1>, scalar_prefetch = 0 : i64, scratch_operands = 0 : i64, tpu.core_type = #tpu.core_type<tc>, window_params = [{transform_indices = @transform_0, window_bounds = array<i64: 64, 256>}, {pipeline_mode = #tpu.pipeline_mode<synchronous>, transform_indices = @transform_1, window_bounds = array<i64: 264, 32>}, {pipeline_mode = #tpu.pipeline_mode<synchronous>, transform_indices = @transform_2, window_bounds = array<i64: 40, 16>}, {pipeline_mode = #tpu.pipeline_mode<synchronous>, transform_indices = @transform_3, window_bounds = array<i64: 24, 8>}, {pipeline_mode = #tpu.pipeline_mode<synchronous>, transform_indices = @transform_4, window_bounds = array<i64: 16, 16>}, {pipeline_mode = #tpu.pipeline_mode<synchronous>, transform_indices = @transform_5, window_bounds = array<i64: 24, 32>}, {pipeline_mode = #tpu.pipeline_mode<synchronous>, transform_indices = @transform_6, window_bounds = array<i64: 40, 256>}, {transform_indices = @transform_7, window_bounds = array<i64: 64, 256>}]} {
    %c0 = arith.constant 0 : index
    %c0_0 = arith.constant 0 : index
    %0 = vector.load %arg1[%c0, %c0_0] : memref<64x256xf32, #tpu.memory_space<vmem>>, vector<64x256xf32>
    %c0_1 = arith.constant 0 : index
    %c0_2 = arith.constant 0 : index
    %1 = vector.load %arg2[%c0_1, %c0_2] : memref<264x32xf32, #tpu.memory_space<vmem>>, vector<256x32xf32>
    %c256 = arith.constant 256 : index
    %c0_3 = arith.constant 0 : index
    %2 = vector.load %arg2[%c256, %c0_3] : memref<264x32xf32, #tpu.memory_space<vmem>>, vector<1x32xf32>
    %cst = arith.constant dense<0.000000e+00> : vector<64x32xf32>
    %3 = tpu.matmul %0, %1, %cst {dimension_numbers = #tpu.dot_dimension_numbers<[1], [0], [0], [1], [0, 0, 1, 1], [], []>} : vector<64x256xf32>, vector<256x32xf32>, vector<64x32xf32> -> vector<64x32xf32>
    %4 = vector.broadcast %2 : vector<1x32xf32> to vector<64x32xf32>
    %5 = arith.addf %3, %4 : vector<64x32xf32>
    %cst_4 = arith.constant 0.000000e+00 : f32
    %6 = vector.broadcast %cst_4 : f32 to vector<64x32xf32>
    %7 = arith.maximumf %5, %6 : vector<64x32xf32>
    %c0_5 = arith.constant 0 : index
    %c0_6 = arith.constant 0 : index
    %8 = vector.load %arg3[%c0_5, %c0_6] : memref<40x16xf32, #tpu.memory_space<vmem>>, vector<32x16xf32>
    %c32 = arith.constant 32 : index
    %c0_7 = arith.constant 0 : index
    %9 = vector.load %arg3[%c32, %c0_7] : memref<40x16xf32, #tpu.memory_space<vmem>>, vector<1x16xf32>
    %cst_8 = arith.constant dense<0.000000e+00> : vector<64x16xf32>
    %10 = tpu.matmul %7, %8, %cst_8 {dimension_numbers = #tpu.dot_dimension_numbers<[1], [0], [0], [1], [0, 0, 1, 1], [], []>} : vector<64x32xf32>, vector<32x16xf32>, vector<64x16xf32> -> vector<64x16xf32>
    %11 = vector.broadcast %9 : vector<1x16xf32> to vector<64x16xf32>
    %12 = arith.addf %10, %11 : vector<64x16xf32>
    %cst_9 = arith.constant 0.000000e+00 : f32
    %13 = vector.broadcast %cst_9 : f32 to vector<64x16xf32>
    %14 = arith.maximumf %12, %13 : vector<64x16xf32>
    %c0_10 = arith.constant 0 : index
    %c0_11 = arith.constant 0 : index
    %15 = vector.load %arg4[%c0_10, %c0_11] : memref<24x8xf32, #tpu.memory_space<vmem>>, vector<16x8xf32>
    %c16 = arith.constant 16 : index
    %c0_12 = arith.constant 0 : index
    %16 = vector.load %arg4[%c16, %c0_12] : memref<24x8xf32, #tpu.memory_space<vmem>>, vector<1x8xf32>
    %cst_13 = arith.constant dense<0.000000e+00> : vector<64x8xf32>
    %17 = tpu.matmul %14, %15, %cst_13 {dimension_numbers = #tpu.dot_dimension_numbers<[1], [0], [0], [1], [0, 0, 1, 1], [], []>} : vector<64x16xf32>, vector<16x8xf32>, vector<64x8xf32> -> vector<64x8xf32>
    %18 = vector.broadcast %16 : vector<1x8xf32> to vector<64x8xf32>
    %19 = arith.addf %17, %18 : vector<64x8xf32>
    %cst_14 = arith.constant 0.000000e+00 : f32
    %20 = vector.broadcast %cst_14 : f32 to vector<64x8xf32>
    %21 = arith.maximumf %19, %20 : vector<64x8xf32>
    %c0_15 = arith.constant 0 : index
    %c0_16 = arith.constant 0 : index
    %22 = vector.load %arg5[%c0_15, %c0_16] : memref<16x16xf32, #tpu.memory_space<vmem>>, vector<8x16xf32>
    %c8 = arith.constant 8 : index
    %c0_17 = arith.constant 0 : index
    %23 = vector.load %arg5[%c8, %c0_17] : memref<16x16xf32, #tpu.memory_space<vmem>>, vector<1x16xf32>
    %cst_18 = arith.constant dense<0.000000e+00> : vector<64x16xf32>
    %24 = tpu.matmul %21, %22, %cst_18 {dimension_numbers = #tpu.dot_dimension_numbers<[1], [0], [0], [1], [0, 0, 1, 1], [], []>} : vector<64x8xf32>, vector<8x16xf32>, vector<64x16xf32> -> vector<64x16xf32>
    %25 = vector.broadcast %23 : vector<1x16xf32> to vector<64x16xf32>
    %26 = arith.addf %24, %25 : vector<64x16xf32>
    %cst_19 = arith.constant 0.000000e+00 : f32
    %27 = vector.broadcast %cst_19 : f32 to vector<64x16xf32>
    %28 = arith.maximumf %26, %27 : vector<64x16xf32>
    %c0_20 = arith.constant 0 : index
    %c0_21 = arith.constant 0 : index
    %29 = vector.load %arg6[%c0_20, %c0_21] : memref<24x32xf32, #tpu.memory_space<vmem>>, vector<16x32xf32>
    %c16_22 = arith.constant 16 : index
    %c0_23 = arith.constant 0 : index
    %30 = vector.load %arg6[%c16_22, %c0_23] : memref<24x32xf32, #tpu.memory_space<vmem>>, vector<1x32xf32>
    %cst_24 = arith.constant dense<0.000000e+00> : vector<64x32xf32>
    %31 = tpu.matmul %28, %29, %cst_24 {dimension_numbers = #tpu.dot_dimension_numbers<[1], [0], [0], [1], [0, 0, 1, 1], [], []>} : vector<64x16xf32>, vector<16x32xf32>, vector<64x32xf32> -> vector<64x32xf32>
    %32 = vector.broadcast %30 : vector<1x32xf32> to vector<64x32xf32>
    %33 = arith.addf %31, %32 : vector<64x32xf32>
    %cst_25 = arith.constant 0.000000e+00 : f32
    %34 = vector.broadcast %cst_25 : f32 to vector<64x32xf32>
    %35 = arith.maximumf %33, %34 : vector<64x32xf32>
    %c0_26 = arith.constant 0 : index
    %c0_27 = arith.constant 0 : index
    %36 = vector.load %arg7[%c0_26, %c0_27] : memref<40x256xf32, #tpu.memory_space<vmem>>, vector<32x256xf32>
    %c32_28 = arith.constant 32 : index
    %c0_29 = arith.constant 0 : index
    %37 = vector.load %arg7[%c32_28, %c0_29] : memref<40x256xf32, #tpu.memory_space<vmem>>, vector<1x256xf32>
    %cst_30 = arith.constant dense<0.000000e+00> : vector<64x256xf32>
    %38 = tpu.matmul %35, %36, %cst_30 {dimension_numbers = #tpu.dot_dimension_numbers<[1], [0], [0], [1], [0, 0, 1, 1], [], []>} : vector<64x32xf32>, vector<32x256xf32>, vector<64x256xf32> -> vector<64x256xf32>
    %39 = vector.broadcast %37 : vector<1x256xf32> to vector<64x256xf32>
    %40 = arith.addf %38, %39 : vector<64x256xf32>
    %cst_31 = arith.constant 5.000000e-01 : f32
    %41 = vector.broadcast %cst_31 : f32 to vector<64x256xf32>
    %42 = arith.mulf %41, %40 : vector<64x256xf32>
    %43 = math.tanh %42 : vector<64x256xf32>
    %cst_32 = arith.constant 5.000000e-01 : f32
    %44 = vector.broadcast %cst_32 : f32 to vector<64x256xf32>
    %45 = arith.mulf %44, %43 : vector<64x256xf32>
    %cst_33 = arith.constant 5.000000e-01 : f32
    %46 = vector.broadcast %cst_33 : f32 to vector<64x256xf32>
    %47 = arith.addf %45, %46 : vector<64x256xf32>
    %c0_34 = arith.constant 0 : index
    %c0_35 = arith.constant 0 : index
    %48 = vector.load %arg8[%c0_34, %c0_35] : memref<64x256xf32, #tpu.memory_space<vmem>>, vector<64x256xf32>
    tpu.vector_store %arg8[%c0_34, %c0_35], %47 {strides = array<i32>} : memref<64x256xf32, #tpu.memory_space<vmem>>, vector<64x256xf32>,
    return
  }
  func.func @transform_0(%arg0: i32) -> (i32, i32) {
    %c0_i32 = arith.constant 0 : i32
    %c0_i32_0 = arith.constant 0 : i32
    return %arg0, %c0_i32 : i32, i32
  }
  func.func @transform_1(%arg0: i32) -> (i32, i32) {
    %c0_i32 = arith.constant 0 : i32
    %c0_i32_0 = arith.constant 0 : i32
    %c0_i32_1 = arith.constant 0 : i32
    return %c0_i32, %c0_i32_0 : i32, i32
  }
  func.func @transform_2(%arg0: i32) -> (i32, i32) {
    %c0_i32 = arith.constant 0 : i32
    %c0_i32_0 = arith.constant 0 : i32
    %c0_i32_1 = arith.constant 0 : i32
    return %c0_i32, %c0_i32_0 : i32, i32
  }
  func.func @transform_3(%arg0: i32) -> (i32, i32) {
    %c0_i32 = arith.constant 0 : i32
    %c0_i32_0 = arith.constant 0 : i32
    %c0_i32_1 = arith.constant 0 : i32
    return %c0_i32, %c0_i32_0 : i32, i32
  }
  func.func @transform_4(%arg0: i32) -> (i32, i32) {
    %c0_i32 = arith.constant 0 : i32
    %c0_i32_0 = arith.constant 0 : i32
    %c0_i32_1 = arith.constant 0 : i32
    return %c0_i32, %c0_i32_0 : i32, i32
  }
  func.func @transform_5(%arg0: i32) -> (i32, i32) {
    %c0_i32 = arith.constant 0 : i32
    %c0_i32_0 = arith.constant 0 : i32
    %c0_i32_1 = arith.constant 0 : i32
    return %c0_i32, %c0_i32_0 : i32, i32
  }
  func.func @transform_6(%arg0: i32) -> (i32, i32) {
    %c0_i32 = arith.constant 0 : i32
    %c0_i32_0 = arith.constant 0 : i32
    %c0_i32_1 = arith.constant 0 : i32
    return %c0_i32, %c0_i32_0 : i32, i32
  }
  func.func @transform_7(%arg0: i32) -> (i32, i32) {
    %c0_i32 = arith.constant 0 : i32
    %c0_i32_0 = arith.constant 0 : i32
    return %arg0, %c0_i32 : i32, i32
  }
}

</mosaic_0001>

<bundles_post_ra>
// kernel: tpu_custom_call.1
= control target key start
LH: loop header
LB: loop body
LE: loop exit
PB: predicated region body
PF: predicated region fallthrough
CT: control target
= control target key end

     0   :  { %s1148_s0 = inlined_call_operand.vmem [shape: f32[64,256], index: 0, kind: input, shape index: {}]   ;;  %s1149_s1 = inlined_call_operand.vmem [shape: f32[264,32], index: 1, kind: input, shape index: {}]   ;;  %s1150_s2 = inlined_call_operand.vmem [shape: f32[40,16], index: 2, kind: input, shape index: {}]   ;;  %s1151_s3 = inlined_call_operand.vmem [shape: f32[24,8], index: 3, kind: input, shape index: {}]   ;;  %s1152_s4 = inlined_call_operand.vmem [shape: f32[16,16], index: 4, kind: input, shape index: {}]   ;;  %s1153_s5 = inlined_call_operand.vmem [shape: f32[24,32], index: 5, kind: input, shape index: {}]   ;;  %s1154_s6 = inlined_call_operand.vmem [shape: f32[40,256], index: 6, kind: input, shape index: {}]   ;;  %s1155_s7 = inlined_call_operand.hbm [shape: f32[64,256], index: 7, kind: output, shape index: {}]  }
   0x1   :  { %v58_v0 = vld [vmem:[%s1149_s1 + $0x78] sm:$0xff]  ;;  %v57_v1 = vld [vmem:[%s1149_s1 + $0x70] sm:$0xff]  ;;  %v56_v4 = vld [vmem:[%s1149_s1 + $0x68] sm:$0xff] }
   0x2   :  { %v74_v2 = vld [vmem:[%s1149_s1 + $0xf8] sm:$0xff]  ;;  %77 = vmatpush.msra.mxu0 %v58_v0  ;;  %v73_v3 = vld [vmem:[%s1149_s1 + $0xf0] sm:$0xff]  ;;  %v72_v5 = vld [vmem:[%s1149_s1 + $0xe8] sm:$0xff] }
   0x3   :  { %118 = vmatpush.msra.mxu1 %v74_v2  ;;  %v55_v6 = vld [vmem:[%s1149_s1 + $0x60] sm:$0xff]  ;;  %v54_v8 = vld [vmem:[%s1149_s1 + $0x58] sm:$0xff]  ;;  %v53_v10 = vld [vmem:[%s1149_s1 + $0x50] sm:$0xff] }
   0x4   :  { %78 = vmatpush.msra.mxu0 %v57_v1  ;;  %v71_v7 = vld [vmem:[%s1149_s1 + $0xe0] sm:$0xff]  ;;  %v70_v9 = vld [vmem:[%s1149_s1 + $0xd8] sm:$0xff]  ;;  %v69_v11 = vld [vmem:[%s1149_s1 + $0xd0] sm:$0xff] }
   0x5   :  { %119 = vmatpush.msra.mxu1 %v73_v3  ;;  %v52_v12 = vld [vmem:[%s1149_s1 + $0x48] sm:$0xff]  ;;  %v51_v14 = vld [vmem:[%s1149_s1 + $0x40] sm:$0xff]  ;;  %v50_v16 = vld [vmem:[%s1149_s1 + $0x38] sm:$0xff] }
   0x6   :  { %79 = vmatpush.msra.mxu0 %v56_v4  ;;  %v68_v13 = vld [vmem:[%s1149_s1 + $0xc8] sm:$0xff]  ;;  %v67_v15 = vld [vmem:[%s1149_s1 + $0xc0] sm:$0xff]  ;;  %v66_v17 = vld [vmem:[%s1149_s1 + $0xb8] sm:$0xff] }
   0x7   :  { %120 = vmatpush.msra.mxu1 %v72_v5 }
   0x8   :  { %80 = vmatpush.msra.mxu0 %v55_v6 }
   0x9   :  { %121 = vmatpush.msra.mxu1 %v71_v7 }
   0xa   :  { %81 = vmatpush.msra.mxu0 %v54_v8 }
   0xb   :  { %122 = vmatpush.msra.mxu1 %v70_v9 }
   0xc   :  { %82 = vmatpush.msra.mxu0 %v53_v10 }
   0xd   :  { %123 = vmatpush.msra.mxu1 %v69_v11 }
   0xe   :  { %83 = vmatpush.msra.mxu0 %v52_v12 }
   0xf   :  { %124 = vmatpush.msra.mxu1 %v68_v13 }
  0x10   :  { %12 = vsyncpa [#allocation3], 0  ;;  %84 = vmatpush.msra.mxu0 %v51_v14  ;;  %v49_v18 = vld [vmem:[%s1149_s1 + $0x30] sm:$0xff]  ;;  %v48_v20 = vld [vmem:[%s1149_s1 + $0x28] sm:$0xff]  ;;  %vm173_vm0 = vcmask 261120   ;;  %vm251_vm1 = vcmask 130048  }
  0x11   :  { %125 = vmatpush.msra.mxu1 %v67_v15  ;;  %v65_v19 = vld [vmem:[%s1149_s1 + $0xb0] sm:$0xff]  ;;  %v64_v21 = vld [vmem:[%s1149_s1 + $0xa8] sm:$0xff]  ;;  %v47_v22 = vld [vmem:[%s1149_s1 + $0x20] sm:$0xff]  ;;  %vm328_vm2 = vcmask 64512   ;;  %s822_s22 = smov 256   ;;  %s823_s23 = smov 16  }
  0x12   :  { %85 = vmatpush.msra.mxu0 %v50_v16  ;;  %v63_v23 = vld [vmem:[%s1149_s1 + $0xa0] sm:$0xff]  ;;  %v46_v24 = vld [vmem:[%s1149_s1 + $0x18] sm:$0xff]  ;;  %v45_v26 = vld [vmem:[%s1149_s1 + $0x10] sm:$0xff] }
  0x13   :  { %126 = vmatpush.msra.mxu1 %v66_v17  ;;  %v62_v25 = vld [vmem:[%s1149_s1 + $0x98] sm:$0xff]  ;;  %v61_v27 = vld [vmem:[%s1149_s1 + $0x90] sm:$0xff]  ;;  %v44_v28 = vld [vmem:[%s1149_s1 + $0x8] sm:$0xff] }
  0x14   :  { %86 = vmatpush.msra.mxu0 %v49_v18  ;;  %v60_v29 = vld [vmem:[%s1149_s1 + $0x88] sm:$0xff]  ;;  %v43_v30 = vld [vmem:[%s1149_s1] sm:$0xff]  ;;  %v29_v34 = vld [vmem:[%s1148_s0 + $0x10] sm:$0xff] }
  0x15   :  { %127 = vmatpush.msra.mxu1 %v65_v19  ;;  %v59_v31 = vld [vmem:[%s1149_s1 + $0x80] sm:$0xff]  ;;  %v28_v33 = vld [vmem:[%s1148_s0 + $0x8] sm:$0xff]  ;;  %v30_v35 = vld [vmem:[%s1148_s0 + $0x18] sm:$0xff] }
  0x16   :  { %87 = vmatpush.msra.mxu0 %v48_v20  ;;  %v27_v32 = vld [vmem:[%s1148_s0] sm:$0xff]  ;;  %v32_v37 = vld [vmem:[%s1148_s0 + $0x28] sm:$0xff]  ;;  %v33_v38 = vld [vmem:[%s1148_s0 + $0x30] sm:$0xff] }
  0x17   :  { %128 = vmatpush.msra.mxu1 %v64_v21  ;;  %v31_v36 = vld [vmem:[%s1148_s0 + $0x20] sm:$0xff]  ;;  %v34_v39 = vld [vmem:[%s1148_s0 + $0x38] sm:$0xff]  ;;  %v36_v41 = vld [vmem:[%s1148_s0 + $0x48] sm:$0xff] }
  0x18   :  { %88 = vmatpush.msra.mxu0 %v47_v22  ;;  %v35_v40 = vld [vmem:[%s1148_s0 + $0x40] sm:$0xff]  ;;  %v37_v42 = vld [vmem:[%s1148_s0 + $0x50] sm:$0xff]  ;;  %v38_v43 = vld [vmem:[%s1148_s0 + $0x58] sm:$0xff] }
  0x19   :  { %129 = vmatpush.msra.mxu1 %v63_v23  ;;  %v39_v44 = vld [vmem:[%s1148_s0 + $0x60] sm:$0xff]  ;;  %v40_v45 = vld [vmem:[%s1148_s0 + $0x68] sm:$0xff]  ;;  %v41_v46 = vld [vmem:[%s1148_s0 + $0x70] sm:$0xff] }
  0x1a   :  { %89 = vmatpush.msra.mxu0 %v46_v24  ;;  %v42_v47 = vld [vmem:[%s1148_s0 + $0x78] sm:$0xff]  ;;  %v169_v49 = vld [vmem:[%s1150_s2 + $0x10] sm:$0xff]  ;;  %v168_v50 = vld [vmem:[%s1150_s2 + $0x8] sm:$0xff] }
  0x1b   :  { %130 = vmatpush.msra.mxu1 %v62_v25  ;;  %v170_v48 = vld [vmem:[%s1150_s2 + $0x18] sm:$0xff]  ;;  %v167_v51 = vld [vmem:[%s1150_s2] sm:$0xff] }
  0x1c   :  { %90 = vmatpush.msra.mxu0 %v45_v26  ;;  %210 = vmatpush.msra.mxu2 %v170_v48  ;;  %v758_v52 = vld [vmem:[%s1149_s1 + $0x100] ss:$0 sm:$0xff] }
  0x1d   :  { %131 = vmatpush.msra.mxu1 %v61_v27 }
  0x1e   :  { %91 = vmatpush.msra.mxu0 %v44_v28  ;;  %211 = vmatpush.msra.mxu2 %v169_v49 }
  0x1f   :  { %132 = vmatpush.msra.mxu1 %v60_v29  ;;  %v248_v29 = vld [vmem:[%s1151_s3 + $0x8] sm:$0xff] }
  0x20   :  { %92 = vmatpush.msra.mxu0 %v43_v30  ;;  %212 = vmatpush.msra.mxu2 %v168_v50  ;;  %v247_v30 = vld [vmem:[%s1151_s3] sm:$0xff] }
  0x21   :  { %133 = vmatpush.msra.mxu1 %v59_v31  ;;  %93 = vmatmul.f32.vlgmr.msra.gmra.mxu0 %v27_v32  ;;  %v759_v31 = vld [vmem:[%s1150_s2 + $0x20] ss:$0 sm:$0xff] }
  0x22   :  { %134 = vmatmul.f32.vlgmr.msra.gmra.mxu1 %v28_v33  ;;  %213 = vmatpush.msra.mxu2 %v167_v51 }
  0x23   :  { %290 = vmatpush.msra.mxu3 %v248_v29 }
  0x25   :  { %291 = vmatpush.msra.mxu3 %v247_v30 }
  0x29   :  { %96 = vmatmul.f32.gmra.mxu0 %v29_v34 }
  0x2a   :  { %137 = vmatmul.f32.gmra.mxu1 %v30_v35 }
  0x31   :  { %99 = vmatmul.f32.gmra.mxu0 %v31_v36 }
  0x32   :  { %140 = vmatmul.f32.gmra.mxu1 %v32_v37 }
  0x39   :  { %102 = vmatmul.f32.gmra.mxu0 %v33_v38 }
  0x3a   :  { %143 = vmatmul.f32.gmra.mxu1 %v34_v39 }
  0x41   :  { %105 = vmatmul.f32.gmra.mxu0 %v35_v40 }
  0x42   :  { %146 = vmatmul.f32.gmra.mxu1 %v36_v41 }
  0x49   :  { %108 = vmatmul.f32.gmra.mxu0 %v37_v42 }
  0x4a   :  { %149 = vmatmul.f32.gmra.mxu1 %v38_v43 }
  0x51   :  { %111 = vmatmul.f32.gmra.mxu0 %v39_v44  ;;  %v325_v44 = vld [vmem:[%s1152_s4] sm:$0xff] }
  0x52   :  { %152 = vmatmul.f32.gmra.mxu1 %v40_v45  ;;  %368 = vmatpush.msrb.mxu3 %v325_v44 }
  0x59   :  { %114 = vmatmul.f32.gmra.mxu0 %v41_v46 }
  0x5a   :  { %155 = vmatmul.f32.gmra.mxu1 %v42_v47 }
  0x9e   :  { %v94_v53 = vpop.f32.mrf.mxu0 }
  0x9f   :  { %v135_v54 = vpop.f32.mrf.mxu1  ;;  %v95_v55 = vadd.f32 %v758_v52, %v94_v53 }
  0xa1   :  { %v136_v56 = vadd.f32 %v135_v54, %v95_v55 }
  0xa3   :  { %v159_v57 = vmax.f32 %v136_v56, 0.0 }
  0xa5   :  { %698 = vmatmul.msk.f32.vlgmr.msra.gmra.mxu2 %vm173_vm0, %v159_v57  ;;  %v760_v57 = vld [vmem:[%s1151_s3 + $0x10] ss:$0 sm:$0xff]  ;;  %s686_s3 = sshll.u32 %s1155_s7, 4  ;;  %s687_s3 = int_to_ptr.hbm [resolvable:$true] %s686_s3 }
  0xa6   :  { %v97_v58 = vpop.f32.mrf.mxu0 }
  0xa7   :  { %v138_v59 = vpop.f32.mrf.mxu1  ;;  %v98_v60 = vadd.f32 %v758_v52, %v97_v58 }
  0xa9   :  { %v139_v61 = vadd.f32 %v138_v59, %v98_v60 }
  0xab   :  { %v160_v62 = vmax.f32 %v139_v61, 0.0 }
  0xad   :  { %699 = vmatmul.msk.f32.gmra.mxu2 %vm173_vm0, %v160_v62 }
  0xae   :  { %v100_v63 = vpop.f32.mrf.mxu0 }
  0xaf   :  { %v141_v0 = vpop.f32.mrf.mxu1  ;;  %v101_v1 = vadd.f32 %v758_v52, %v100_v63 }
  0xb1   :  { %v142_v2 = vadd.f32 %v141_v0, %v101_v1 }
  0xb3   :  { %v161_v3 = vmax.f32 %v142_v2, 0.0 }
  0xb5   :  { %700 = vmatmul.msk.f32.gmra.mxu2 %vm173_vm0, %v161_v3 }
  0xb6   :  { %v103_v4 = vpop.f32.mrf.mxu0 }
  0xb7   :  { %v144_v5 = vpop.f32.mrf.mxu1  ;;  %v104_v6 = vadd.f32 %v758_v52, %v103_v4 }
  0xb9   :  { %v145_v7 = vadd.f32 %v144_v5, %v104_v6  ;;  %v403_v6 = vld [vmem:[%s1153_s5 + $0x8] sm:$0xff] }
  0xba   :  { %444 = vmatpush.msrb.mxu2 %v403_v6 }
  0xbb   :  { %v162_v8 = vmax.f32 %v145_v7, 0.0  ;;  %v402_v7 = vld [vmem:[%s1153_s5] sm:$0xff] }
  0xbc   :  { %445 = vmatpush.msrb.mxu2 %v402_v7 }
  0xbd   :  { %701 = vmatmul.msk.f32.gmra.mxu2 %vm173_vm0, %v162_v8 }
  0xbe   :  { %v106_v9 = vpop.f32.mrf.mxu0 }
  0xbf   :  { %v147_v10 = vpop.f32.mrf.mxu1  ;;  %v107_v11 = vadd.f32 %v758_v52, %v106_v9 }
  0xc1   :  { %v148_v12 = vadd.f32 %v147_v10, %v107_v11 }
  0xc3   :  { %v163_v13 = vmax.f32 %v148_v12, 0.0 }
  0xc5   :  { %702 = vmatmul.msk.f32.gmra.mxu2 %vm173_vm0, %v163_v13 }
  0xc6   :  { %v109_v14 = vpop.f32.mrf.mxu0 }
  0xc7   :  { %v150_v15 = vpop.f32.mrf.mxu1  ;;  %v110_v16 = vadd.f32 %v758_v52, %v109_v14 }
  0xc9   :  { %v151_v17 = vadd.f32 %v150_v15, %v110_v16 }
  0xcb   :  { %v164_v18 = vmax.f32 %v151_v17, 0.0 }
  0xcd   :  { %703 = vmatmul.msk.f32.gmra.mxu2 %vm173_vm0, %v164_v18 }
  0xce   :  { %v112_v19 = vpop.f32.mrf.mxu0 }
  0xcf   :  { %v153_v20 = vpop.f32.mrf.mxu1  ;;  %v113_v21 = vadd.f32 %v758_v52, %v112_v19 }
  0xd1   :  { %v154_v22 = vadd.f32 %v153_v20, %v113_v21  ;;  %v761_v20 = vld [vmem:[%s1152_s4 + $0x8] ss:$0 sm:$0xff] }
  0xd3   :  { %v165_v23 = vmax.f32 %v154_v22, 0.0 }
  0xd5   :  { %704 = vmatmul.msk.f32.gmra.mxu2 %vm173_vm0, %v165_v23 }
  0xd6   :  { %v115_v24 = vpop.f32.mrf.mxu0 }
  0xd7   :  { %v156_v25 = vpop.f32.mrf.mxu1  ;;  %v116_v26 = vadd.f32 %v758_v52, %v115_v24 }
  0xd9   :  { %v157_v27 = vadd.f32 %v156_v25, %v116_v26 }
  0xdb   :  { %v166_v28 = vmax.f32 %v157_v27, 0.0 }
  0xdd   :  { %705 = vmatmul.msk.f32.gmra.mxu2 %vm173_vm0, %v166_v28 }
 0x128   :  { %v215_v32 = vpop.f32.mrf.mxu2 }
 0x129   :  { %v216_v33 = vadd.f32 %v759_v31, %v215_v32 }
 0x12b   :  { %v239_v34 = vmax.f32 %v216_v33, 0.0  ;;  %v485_v33 = vld [vmem:[%s1154_s6 + $0x30] sm:$0xff] }
 0x12c   :  { %530 = vmatpush.msrb.mxu0 %v485_v33 }
 0x12d   :  { %706 = vmatmul.msk.f32.vlgmr.msra.gmra.mxu3 %vm251_vm1, %v239_v34  ;;  %v486_v34 = vld [vmem:[%s1154_s6 + $0x38] sm:$0xff] }
 0x12e   :  { %571 = vmatpush.msrb.mxu1 %v486_v34  ;;  %747 = vmatpush.msra.mxu3 %v485_v33 }
 0x12f   :  { %751 = vmatpush.msra.mxu2 %v486_v34 }
 0x130   :  { %v218_v35 = vpop.f32.mrf.mxu2 }
 0x131   :  { %v219_v36 = vadd.f32 %v759_v31, %v218_v35  ;;  %v483_v35 = vld [vmem:[%s1154_s6 + $0x20] sm:$0xff] }
 0x132   :  { %531 = vmatpush.msrb.mxu0 %v483_v35  ;;  %748 = vmatpush.msra.mxu3 %v483_v35 }
 0x133   :  { %v240_v37 = vmax.f32 %v219_v36, 0.0  ;;  %v484_v36 = vld [vmem:[%s1154_s6 + $0x28] sm:$0xff] }
 0x134   :  { %572 = vmatpush.msrb.mxu1 %v484_v36  ;;  %752 = vmatpush.msra.mxu2 %v484_v36 }
 0x135   :  { %707 = vmatmul.msk.f32.gmra.mxu3 %vm251_vm1, %v240_v37  ;;  %v481_v37 = vld [vmem:[%s1154_s6 + $0x10] sm:$0xff] }
 0x136   :  { %532 = vmatpush.msrb.mxu0 %v481_v37  ;;  %749 = vmatpush.msra.mxu3 %v481_v37 }
 0x138   :  { %v221_v38 = vpop.f32.mrf.mxu2 }
 0x139   :  { %v222_v39 = vadd.f32 %v759_v31, %v221_v38  ;;  %v482_v38 = vld [vmem:[%s1154_s6 + $0x18] sm:$0xff] }
 0x13a   :  { %573 = vmatpush.msrb.mxu1 %v482_v38  ;;  %753 = vmatpush.msra.mxu2 %v482_v38 }
 0x13b   :  { %v241_v40 = vmax.f32 %v222_v39, 0.0 }
 0x13d   :  { %708 = vmatmul.msk.f32.gmra.mxu3 %vm251_vm1, %v241_v40 }
 0x140   :  { %v224_v41 = vpop.f32.mrf.mxu2 }
 0x141   :  { %v225_v42 = vadd.f32 %v759_v31, %v224_v41 }
 0x143   :  { %v242_v43 = vmax.f32 %v225_v42, 0.0 }
 0x145   :  { %709 = vmatmul.msk.f32.gmra.mxu3 %vm251_vm1, %v242_v43 }
 0x148   :  { %v227_v45 = vpop.f32.mrf.mxu2 }
 0x149   :  { %v228_v46 = vadd.f32 %v759_v31, %v227_v45 }
 0x14b   :  { %v243_v47 = vmax.f32 %v228_v46, 0.0 }
 0x14d   :  { %710 = vmatmul.msk.f32.gmra.mxu3 %vm251_vm1, %v243_v47 }
 0x150   :  { %v230_v48 = vpop.f32.mrf.mxu2 }
 0x151   :  { %v231_v49 = vadd.f32 %v759_v31, %v230_v48 }
 0x153   :  { %v244_v50 = vmax.f32 %v231_v49, 0.0 }
 0x155   :  { %711 = vmatmul.msk.f32.gmra.mxu3 %vm251_vm1, %v244_v50 }
 0x158   :  { %v233_v51 = vpop.f32.mrf.mxu2 }
 0x159   :  { %v234_v52 = vadd.f32 %v759_v31, %v233_v51  ;;  %v479_v51 = vld [vmem:[%s1154_s6] sm:$0xff] }
 0x15a   :  { %533 = vmatpush.msrb.mxu0 %v479_v51  ;;  %750 = vmatpush.msra.mxu3 %v479_v51 }
 0x15b   :  { %v245_v53 = vmax.f32 %v234_v52, 0.0  ;;  %v480_v52 = vld [vmem:[%s1154_s6 + $0x8] sm:$0xff] }
 0x15c   :  { %574 = vmatpush.msrb.mxu1 %v480_v52  ;;  %754 = vmatpush.msra.mxu2 %v480_v52 }
 0x15d   :  { %712 = vmatmul.msk.f32.gmra.mxu3 %vm251_vm1, %v245_v53  ;;  %v762_v53 = vld [vmem:[%s1153_s5 + $0x10] ss:$0 sm:$0xff] }
 0x160   :  { %v236_v54 = vpop.f32.mrf.mxu2 }
 0x161   :  { %v237_v55 = vadd.f32 %v759_v31, %v236_v54 }
 0x163   :  { %v246_v56 = vmax.f32 %v237_v55, 0.0 }
 0x165   :  { %713 = vmatmul.msk.f32.gmra.mxu3 %vm251_vm1, %v246_v56 }
 0x1b0   :  { %v293_v58 = vpop.f32.mrf.mxu3 }
 0x1b1   :  { %v294_v59 = vadd.f32 %v760_v57, %v293_v58 }
 0x1b3   :  { %v317_v60 = vmax.f32 %v294_v59, 0.0 }
 0x1b5   :  { %714 = vmatmul.msk.f32.vlgmr.msrb.gmra.mxu3 %vm328_vm2, %v317_v60 }
 0x1b8   :  { %v296_v61 = vpop.f32.mrf.mxu3 }
 0x1b9   :  { %v297_v62 = vadd.f32 %v760_v57, %v296_v61 }
 0x1bb   :  { %v318_v63 = vmax.f32 %v297_v62, 0.0 }
 0x1bd   :  { %715 = vmatmul.msk.f32.gmra.mxu3 %vm328_vm2, %v318_v63 }
 0x1c0   :  { %v299_v0 = vpop.f32.mrf.mxu3 }
 0x1c1   :  { %v300_v1 = vadd.f32 %v760_v57, %v299_v0 }
 0x1c3   :  { %v319_v2 = vmax.f32 %v300_v1, 0.0 }
 0x1c5   :  { %716 = vmatmul.msk.f32.gmra.mxu3 %vm328_vm2, %v319_v2 }
 0x1c8   :  { %v302_v3 = vpop.f32.mrf.mxu3 }
 0x1c9   :  { %v303_v4 = vadd.f32 %v760_v57, %v302_v3 }
 0x1cb   :  { %v320_v5 = vmax.f32 %v303_v4, 0.0 }
 0x1cd   :  { %717 = vmatmul.msk.f32.gmra.mxu3 %vm328_vm2, %v320_v5 }
 0x1d0   :  { %v305_v8 = vpop.f32.mrf.mxu3 }
 0x1d1   :  { %v306_v9 = vadd.f32 %v760_v57, %v305_v8 }
 0x1d3   :  { %v321_v10 = vmax.f32 %v306_v9, 0.0 }
 0x1d5   :  { %718 = vmatmul.msk.f32.gmra.mxu3 %vm328_vm2, %v321_v10 }
 0x1d8   :  { %v308_v11 = vpop.f32.mrf.mxu3 }
 0x1d9   :  { %v309_v12 = vadd.f32 %v760_v57, %v308_v11 }
 0x1db   :  { %v322_v13 = vmax.f32 %v309_v12, 0.0 }
 0x1dd   :  { %719 = vmatmul.msk.f32.gmra.mxu3 %vm328_vm2, %v322_v13 }
 0x1e0   :  { %v311_v14 = vpop.f32.mrf.mxu3 }
 0x1e1   :  { %v312_v15 = vadd.f32 %v760_v57, %v311_v14  ;;  %v730_v14 = vld [vmem:[%s1154_s6 + $0x40] ss:$8 sm:$0x3]  ;;  %s821_s6 = smov [#allocation2]  }
 0x1e2   :  { %s684_s19 = sshll.u32 %s821_s6, 4  ;;  %s685_s19 = int_to_ptr.vmem [resolvable:$true] %s684_s19 }
 0x1e3   :  { %v323_v16 = vmax.f32 %v312_v15, 0.0  ;;  %v1125_v15 = vperm.slane %v730_v14, 0 }
 0x1e5   :  { %720 = vmatmul.msk.f32.gmra.mxu3 %vm328_vm2, %v323_v16  ;;  %v1127_v16 = vperm.slane %v730_v14, 1 }
 0x1e8   :  { %v314_v17 = vpop.f32.mrf.mxu3 }
 0x1e9   :  { %v315_v18 = vadd.f32 %v760_v57, %v314_v17 }
 0x1eb   :  { %v324_v19 = vmax.f32 %v315_v18, 0.0 }
 0x1ed   :  { %721 = vmatmul.msk.f32.gmra.mxu3 %vm328_vm2, %v324_v19 }
 0x238   :  { %v370_v21 = vpop.f32.mrf.mxu3 }
 0x239   :  { %v371_v22 = vadd.f32 %v761_v20, %v370_v21 }
 0x23b   :  { %v394_v23 = vmax.f32 %v371_v22, 0.0 }
 0x23d   :  { %722 = vmatmul.msk.f32.vlgmr.msrb.gmra.mxu2 %vm251_vm1, %v394_v23 }
 0x240   :  { %v373_v24 = vpop.f32.mrf.mxu3 }
 0x241   :  { %v374_v25 = vadd.f32 %v761_v20, %v373_v24 }
 0x243   :  { %v395_v26 = vmax.f32 %v374_v25, 0.0 }
 0x245   :  { %723 = vmatmul.msk.f32.gmra.mxu2 %vm251_vm1, %v395_v26 }
 0x248   :  { %v376_v27 = vpop.f32.mrf.mxu3 }
 0x249   :  { %v377_v28 = vadd.f32 %v761_v20, %v376_v27 }
 0x24b   :  { %v396_v29 = vmax.f32 %v377_v28, 0.0 }
 0x24d   :  { %724 = vmatmul.msk.f32.gmra.mxu2 %vm251_vm1, %v396_v29 }
 0x250   :  { %v379_v30 = vpop.f32.mrf.mxu3 }
 0x251   :  { %v380_v31 = vadd.f32 %v761_v20, %v379_v30 }
 0x253   :  { %v397_v32 = vmax.f32 %v380_v31, 0.0 }
 0x255   :  { %725 = vmatmul.msk.f32.gmra.mxu2 %vm251_vm1, %v397_v32 }
 0x258   :  { %v382_v39 = vpop.f32.mrf.mxu3 }
 0x259   :  { %v383_v40 = vadd.f32 %v761_v20, %v382_v39 }
 0x25b   :  { %v398_v41 = vmax.f32 %v383_v40, 0.0 }
 0x25d   :  { %726 = vmatmul.msk.f32.gmra.mxu2 %vm251_vm1, %v398_v41 }
 0x260   :  { %v385_v42 = vpop.f32.mrf.mxu3 }
 0x261   :  { %v386_v43 = vadd.f32 %v761_v20, %v385_v42 }
 0x263   :  { %v399_v44 = vmax.f32 %v386_v43, 0.0 }
 0x265   :  { %727 = vmatmul.msk.f32.gmra.mxu2 %vm251_vm1, %v399_v44 }
 0x268   :  { %v388_v45 = vpop.f32.mrf.mxu3 }
 0x269   :  { %v389_v46 = vadd.f32 %v761_v20, %v388_v45 }
 0x26b   :  { %v400_v47 = vmax.f32 %v389_v46, 0.0 }
 0x26d   :  { %728 = vmatmul.msk.f32.gmra.mxu2 %vm251_vm1, %v400_v47 }
 0x270   :  { %v391_v48 = vpop.f32.mrf.mxu3 }
 0x271   :  { %v392_v49 = vadd.f32 %v761_v20, %v391_v48 }
 0x273   :  { %v401_v50 = vmax.f32 %v392_v49, 0.0 }
 0x275   :  { %729 = vmatmul.msk.f32.gmra.mxu2 %vm251_vm1, %v401_v50 }
 0x2c0   :  { %v447_v54 = vpop.f32.mrf.mxu2 }
 0x2c1   :  { %v448_v55 = vadd.f32 %v762_v53, %v447_v54 }
 0x2c3   :  { %v471_v56 = vmax.f32 %v448_v55, 0.0 }
 0x2c5   :  { %731 = vmatmul.msk.f32.vlgmr.msrb.gmra.mxu0 %vm173_vm0, %v471_v56  ;;  %739 = vmatmul.msk.f32.vlgmr.msrb.gmra.mxu1 %vm173_vm0, %v471_v56 }
 0x2c8   :  { %v450_v57 = vpop.f32.mrf.mxu2 }
 0x2c9   :  { %v451_v58 = vadd.f32 %v762_v53, %v450_v57 }
 0x2cb   :  { %v472_v59 = vmax.f32 %v451_v58, 0.0 }
 0x2cd   :  { %732 = vmatmul.msk.f32.gmra.mxu0 %vm173_vm0, %v472_v59  ;;  %740 = vmatmul.msk.f32.gmra.mxu1 %vm173_vm0, %v472_v59 }
 0x2d0   :  { %v453_v60 = vpop.f32.mrf.mxu2 }
 0x2d1   :  { %v454_v61 = vadd.f32 %v762_v53, %v453_v60 }
 0x2d3   :  { %v473_v62 = vmax.f32 %v454_v61, 0.0 }
 0x2d5   :  { %733 = vmatmul.msk.f32.gmra.mxu0 %vm173_vm0, %v473_v62  ;;  %741 = vmatmul.msk.f32.gmra.mxu1 %vm173_vm0, %v473_v62 }
 0x2d8   :  { %v456_v63 = vpop.f32.mrf.mxu2 }
 0x2d9   :  { %v457_v0 = vadd.f32 %v762_v53, %v456_v63 }
 0x2db   :  { %v474_v1 = vmax.f32 %v457_v0, 0.0 }
 0x2dd   :  { %734 = vmatmul.msk.f32.gmra.mxu0 %vm173_vm0, %v474_v1  ;;  %742 = vmatmul.msk.f32.gmra.mxu1 %vm173_vm0, %v474_v1 }
 0x2e0   :  { %v459_v2 = vpop.f32.mrf.mxu2 }
 0x2e1   :  { %v460_v3 = vadd.f32 %v762_v53, %v459_v2 }
 0x2e3   :  { %v475_v4 = vmax.f32 %v460_v3, 0.0 }
 0x2e5   :  { %735 = vmatmul.msk.f32.gmra.mxu0 %vm173_vm0, %v475_v4  ;;  %743 = vmatmul.msk.f32.gmra.mxu1 %vm173_vm0, %v475_v4 }
 0x2e8   :  { %v462_v5 = vpop.f32.mrf.mxu2 }
 0x2e9   :  { %v463_v6 = vadd.f32 %v762_v53, %v462_v5 }
 0x2eb   :  { %v476_v7 = vmax.f32 %v463_v6, 0.0 }
 0x2ed   :  { %736 = vmatmul.msk.f32.gmra.mxu0 %vm173_vm0, %v476_v7  ;;  %744 = vmatmul.msk.f32.gmra.mxu1 %vm173_vm0, %v476_v7 }
 0x2f0   :  { %v465_v8 = vpop.f32.mrf.mxu2 }
 0x2f1   :  { %v466_v9 = vadd.f32 %v762_v53, %v465_v8 }
 0x2f3   :  { %v477_v10 = vmax.f32 %v466_v9, 0.0 }
 0x2f5   :  { %737 = vmatmul.msk.f32.gmra.mxu0 %vm173_vm0, %v477_v10  ;;  %745 = vmatmul.msk.f32.gmra.mxu1 %vm173_vm0, %v477_v10 }
 0x2f8   :  { %v468_v11 = vpop.f32.mrf.mxu2 }
 0x2f9   :  { %v469_v12 = vadd.f32 %v762_v53, %v468_v11 }
 0x2fb   :  { %v478_v13 = vmax.f32 %v469_v12, 0.0 }
 0x2fd   :  { %738 = vmatmul.msk.f32.vlgmr.msra.gmra.mxu3 %vm173_vm0, %v478_v13  ;;  %746 = vmatmul.msk.f32.vlgmr.msra.gmra.mxu2 %vm173_vm0, %v478_v13 }
 0x342   :  { %v535_v17 = vpop.f32.mrf.mxu0  ;;  %v576_v18 = vpop.f32.mrf.mxu1 }
 0x343   :  { %v536_v19 = vadd.f32 %v535_v17, %v1125_v15  ;;  %v577_v20 = vadd.f32 %v576_v18, %v1127_v16 }
 0x345   :  { %v600_v21 = vmul.f32 0.5, %v536_v19  ;;  %v601_v22 = vmul.f32 0.5, %v577_v20 }
 0x347   :  { %763 = vtanh.f32 %v600_v21 }
 0x348   :  { %765 = vtanh.f32 %v601_v22 }
 0x34a   :  { %v538_v23 = vpop.f32.mrf.mxu0  ;;  %v579_v24 = vpop.f32.mrf.mxu1 }
 0x34b   :  { %v539_v25 = vadd.f32 %v538_v23, %v1125_v15  ;;  %v580_v26 = vadd.f32 %v579_v24, %v1127_v16 }
 0x34d   :  { %v764_v27 = vpop.eup %763  ;;  %v602_v28 = vmul.f32 0.5, %v539_v25  ;;  %v603_v29 = vmul.f32 0.5, %v580_v26 }
 0x34e   :  { %v766_v30 = vpop.eup %765  ;;  %v632_v31 = vmul.f32 0.5, %v764_v27 }
 0x34f   :  { %v633_v32 = vmul.f32 0.5, %v766_v30  ;;  %767 = vtanh.f32 %v602_v28 }
 0x350   :  { %v648_v33 = vadd.f32 0.5, %v632_v31  ;;  %769 = vtanh.f32 %v603_v29 }
 0x351   :  { %v649_v34 = vadd.f32 0.5, %v633_v32 }
 0x352   :  { %664 = vst [vmem:[#allocation2] sm:$0xff] %v648_v33  ;;  %v541_v35 = vpop.f32.mrf.mxu0  ;;  %v582_v36 = vpop.f32.mrf.mxu1 }
 0x353   :  { %665 = vst [vmem:[#allocation2 + $0x8] sm:$0xff] %v649_v34  ;;  %v542_v37 = vadd.f32 %v541_v35, %v1125_v15  ;;  %v583_v38 = vadd.f32 %v582_v36, %v1127_v16 }
 0x355   :  { %v768_v39 = vpop.eup %767  ;;  %v604_v40 = vmul.f32 0.5, %v542_v37  ;;  %v605_v41 = vmul.f32 0.5, %v583_v38 }
 0x356   :  { %v770_v42 = vpop.eup %769  ;;  %v634_v43 = vmul.f32 0.5, %v768_v39 }
 0x357   :  { %v635_v44 = vmul.f32 0.5, %v770_v42  ;;  %771 = vtanh.f32 %v604_v40 }
 0x358   :  { %v650_v45 = vadd.f32 0.5, %v634_v43  ;;  %773 = vtanh.f32 %v605_v41 }
 0x359   :  { %v651_v46 = vadd.f32 0.5, %v635_v44 }
 0x35a   :  { %666 = vst [vmem:[#allocation2 + $0x10] sm:$0xff] %v650_v45  ;;  %v544_v47 = vpop.f32.mrf.mxu0  ;;  %v585_v48 = vpop.f32.mrf.mxu1 }
 0x35b   :  { %667 = vst [vmem:[#allocation2 + $0x18] sm:$0xff] %v651_v46  ;;  %v545_v49 = vadd.f32 %v544_v47, %v1125_v15  ;;  %v586_v50 = vadd.f32 %v585_v48, %v1127_v16 }
 0x35d   :  { %v772_v51 = vpop.eup %771  ;;  %v606_v52 = vmul.f32 0.5, %v545_v49  ;;  %v607_v53 = vmul.f32 0.5, %v586_v50 }
 0x35e   :  { %v774_v54 = vpop.eup %773  ;;  %v636_v55 = vmul.f32 0.5, %v772_v51 }
 0x35f   :  { %v637_v56 = vmul.f32 0.5, %v774_v54  ;;  %775 = vtanh.f32 %v606_v52 }
 0x360   :  { %v652_v57 = vadd.f32 0.5, %v636_v55  ;;  %777 = vtanh.f32 %v607_v53 }
 0x361   :  { %v653_v58 = vadd.f32 0.5, %v637_v56 }
 0x362   :  { %668 = vst [vmem:[#allocation2 + $0x20] sm:$0xff] %v652_v57  ;;  %v547_v59 = vpop.f32.mrf.mxu0  ;;  %v588_v60 = vpop.f32.mrf.mxu1 }
 0x363   :  { %669 = vst [vmem:[#allocation2 + $0x28] sm:$0xff] %v653_v58  ;;  %v548_v61 = vadd.f32 %v547_v59, %v1125_v15  ;;  %v589_v62 = vadd.f32 %v588_v60, %v1127_v16 }
 0x365   :  { %v776_v63 = vpop.eup %775  ;;  %v608_v0 = vmul.f32 0.5, %v548_v61  ;;  %v609_v1 = vmul.f32 0.5, %v589_v62 }
 0x366   :  { %v778_v2 = vpop.eup %777  ;;  %v638_v3 = vmul.f32 0.5, %v776_v63 }
 0x367   :  { %v639_v4 = vmul.f32 0.5, %v778_v2  ;;  %779 = vtanh.f32 %v608_v0 }
 0x368   :  { %v654_v5 = vadd.f32 0.5, %v638_v3  ;;  %781 = vtanh.f32 %v609_v1 }
 0x369   :  { %v655_v6 = vadd.f32 0.5, %v639_v4 }
 0x36a   :  { %670 = vst [vmem:[#allocation2 + $0x30] sm:$0xff] %v654_v5  ;;  %v550_v7 = vpop.f32.mrf.mxu0  ;;  %v591_v8 = vpop.f32.mrf.mxu1 }
 0x36b   :  { %671 = vst [vmem:[#allocation2 + $0x38] sm:$0xff] %v655_v6  ;;  %v551_v9 = vadd.f32 %v550_v7, %v1125_v15  ;;  %v592_v10 = vadd.f32 %v591_v8, %v1127_v16 }
 0x36d   :  { %v780_v11 = vpop.eup %779  ;;  %v610_v12 = vmul.f32 0.5, %v551_v9  ;;  %v611_v13 = vmul.f32 0.5, %v592_v10 }
 0x36e   :  { %v782_v14 = vpop.eup %781  ;;  %v640_v17 = vmul.f32 0.5, %v780_v11 }
 0x36f   :  { %v641_v18 = vmul.f32 0.5, %v782_v14  ;;  %783 = vtanh.f32 %v610_v12 }
 0x370   :  { %v656_v19 = vadd.f32 0.5, %v640_v17  ;;  %785 = vtanh.f32 %v611_v13 }
 0x371   :  { %v657_v20 = vadd.f32 0.5, %v641_v18 }
 0x372   :  { %672 = vst [vmem:[#allocation2 + $0x40] sm:$0xff] %v656_v19  ;;  %v553_v21 = vpop.f32.mrf.mxu0  ;;  %v594_v22 = vpop.f32.mrf.mxu1 }
 0x373   :  { %673 = vst [vmem:[#allocation2 + $0x48] sm:$0xff] %v657_v20  ;;  %v554_v23 = vadd.f32 %v553_v21, %v1125_v15  ;;  %v595_v24 = vadd.f32 %v594_v22, %v1127_v16 }
 0x375   :  { %v784_v25 = vpop.eup %783  ;;  %v612_v26 = vmul.f32 0.5, %v554_v23  ;;  %v613_v27 = vmul.f32 0.5, %v595_v24 }
 0x376   :  { %v786_v28 = vpop.eup %785  ;;  %v642_v29 = vmul.f32 0.5, %v784_v25 }
 0x377   :  { %v643_v30 = vmul.f32 0.5, %v786_v28  ;;  %787 = vtanh.f32 %v612_v26 }
 0x378   :  { %v658_v31 = vadd.f32 0.5, %v642_v29  ;;  %789 = vtanh.f32 %v613_v27 }
 0x379   :  { %v659_v32 = vadd.f32 0.5, %v643_v30 }
 0x37a   :  { %674 = vst [vmem:[#allocation2 + $0x50] sm:$0xff] %v658_v31 }
 0x37b   :  { %675 = vst [vmem:[#allocation2 + $0x58] sm:$0xff] %v659_v32 }
 0x37d   :  { %v788_v33 = vpop.eup %787 }
 0x37e   :  { %v790_v34 = vpop.eup %789  ;;  %v644_v35 = vmul.f32 0.5, %v788_v33 }
 0x37f   :  { %v645_v36 = vmul.f32 0.5, %v790_v34 }
 0x380   :  { %v660_v37 = vadd.f32 0.5, %v644_v35  ;;  %v556_v38 = vpop.f32.mrf.mxu3  ;;  %v597_v39 = vpop.f32.mrf.mxu2 }
 0x381   :  { %v661_v40 = vadd.f32 0.5, %v645_v36  ;;  %v557_v41 = vadd.f32 %v556_v38, %v1125_v15  ;;  %v598_v42 = vadd.f32 %v597_v39, %v1127_v16 }
 0x382   :  { %676 = vst [vmem:[#allocation2 + $0x60] sm:$0xff] %v660_v37 }
 0x383   :  { %677 = vst [vmem:[#allocation2 + $0x68] sm:$0xff] %v661_v40  ;;  %v614_v43 = vmul.f32 0.5, %v557_v41  ;;  %v615_v44 = vmul.f32 0.5, %v598_v42 }
 0x385   :  { %791 = vtanh.f32 %v614_v43 }
 0x386   :  { %793 = vtanh.f32 %v615_v44 }
 0x38b   :  { %v792_v45 = vpop.eup %791 }
 0x38c   :  { %v794_v46 = vpop.eup %793  ;;  %v646_v47 = vmul.f32 0.5, %v792_v45 }
 0x38d   :  { %v647_v48 = vmul.f32 0.5, %v794_v46 }
 0x38e   :  { %v662_v49 = vadd.f32 0.5, %v646_v47 }
 0x38f   :  { %v663_v15 = vadd.f32 0.5, %v647_v48 }
 0x390   :  { %678 = vst [vmem:[#allocation2 + $0x70] sm:$0xff] %v662_v49 }
 0x391   :  { %679 = vst [vmem:[#allocation2 + $0x78] sm:$0xff] %v663_v15 }
 0x392   :  { %692 = dma.vmem_to_hbm [thread:$0]  %s685_s19, 2048, %s687_s3, [#allocation3], %s822_s22, %s822_s22, %s823_s23  }
 0x393   :  { %819 = dma.done.wait [#allocation3], 2048  }
 0x394   :  { %820 = vsyncadd [#allocation3], 4294965248 }
 0x395   :  { %697 = vsyncpa [#allocation3], 1 }

</bundles_post_ra>
